<compile_context>
chip_gen: v6e
topology: v6e:2x2x1
jax: 0.10.0
libtpu: 0.0.40
codegen_flags: <defaults>
</compile_context>

<pallas_src>
import jax
import jax.numpy as jnp
from jax.experimental import pallas as pl
from jax.experimental.pallas import tpu as pltpu


def make_fp_kernel(num_conv_layers, bt, use_bf16_matmul=False):
    """Fused FP-module kernel: bt batch elements x one n-tile per grid step."""
    cdt = jnp.bfloat16 if use_bf16_matmul else jnp.float32

    def kernel(unknown_ref, known_ref, unk_feat_ref, known_feat_ref, *rest):
        out_ref = rest[-1]
        params = rest[:-1]          # flat: (w_scaled, shift) per layer

        tn = unknown_ref.shape[2]
        m = known_ref.shape[1]

        interp_pieces = []
        x_pieces = []
        for b in range(bt):
            uu = unknown_ref[b]          # (3, tn)   unknown xyz
            kk = known_ref[b]            # (m, 3)    known xyz
            kf = known_feat_ref[b]       # (C2, m)   known features

            # ---- three_nn: pairwise squared distances on the VPU ----------
            dist2 = jnp.zeros((m, tn), jnp.float32)
            for d in range(3):
                diff = kk[:, d:d + 1] - uu[d:d + 1, :]      # (m,1)-(1,tn) -> (m,tn)
                dist2 = dist2 + diff * diff

            # ---- top-3 nearest (smallest-index tie break) + weights -------
            row_ids = jax.lax.broadcasted_iota(jnp.int32, (m, tn), 0)
            d_work = dist2
            w_mat = jnp.zeros((m, tn), jnp.float32)
            recip_sum = jnp.zeros((1, tn), jnp.float32)
            for _ in range(3):
                dmin = jnp.min(d_work, axis=0, keepdims=True)               # (1, tn)
                sel = jnp.min(jnp.where(d_work == dmin, row_ids, m),
                              axis=0, keepdims=True)                        # (1, tn)
                is_sel = row_ids == sel                                     # (m, tn)
                r = pl.reciprocal(jnp.sqrt(dmin) + 1e-8, approx=True)       # EUP
                w_mat = jnp.where(is_sel, r, w_mat)
                recip_sum = recip_sum + r
                d_work = jnp.where(is_sel, jnp.inf, d_work)
            w_mat = w_mat * pl.reciprocal(recip_sum, approx=True)           # (m, tn)

            # ---- three_interpolate: (C2, m) @ (m, tn) ----------------------
            interp_pieces.append(
                jnp.dot(kf.astype(cdt), w_mat.astype(cdt),
                        preferred_element_type=jnp.float32))                # (C2, tn)
            x_pieces.append(unk_feat_ref[b])                                # (C1, tn)

        # Stack batch elements along lanes -> one wide slab for the MLP chain.
        interp = jnp.concatenate(interp_pieces, axis=1)      # (C2, bt*tn)
        x_slab = jnp.concatenate(x_pieces, axis=1)           # (C1, bt*tn)

        # ---- mlp_unknow: Conv1d(k=1) + BN (scale folded into weight) -------
        w0 = params[0][...]
        b0 = params[1][...]
        feat = interp + jnp.dot(w0.astype(cdt), x_slab.astype(cdt),
                                preferred_element_type=jnp.float32) + b0

        # ---- mlp_convs: Conv1d(k=1) + BN + ReLU chain -----------------------
        for l in range(num_conv_layers):
            w = params[2 + 2 * l][...]
            s = params[3 + 2 * l][...]
            feat = jnp.dot(w.astype(cdt), feat.astype(cdt),
                           preferred_element_type=jnp.float32) + s
            feat = jnp.maximum(feat, 0.0)

        # ---- lane-dense stores, one batch element at a time -----------------
        for b in range(bt):
            out_ref[b] = feat[:, b * tn:(b + 1) * tn].astype(out_ref.dtype)

    return kernel


def _largest_lane_tile(total, cap, quantum=128):
    """Largest multiple of `quantum` dividing `total` and <= cap (fallback: total)."""
    if total <= cap:
        return total
    best, t = None, quantum
    while t <= cap:
        if total % t == 0:
            best = t
        t += quantum
    return best if best is not None else total


def _largest_divisor(total, cap):
    for d in range(min(total, cap), 0, -1):
        if total % d == 0:
            return d
    return 1


def pointnet_fp_forward(unknown, known, unknow_feats, known_feats, params):
    """params: list of (conv_weight (Cout, Cin), scale (Cout,), shift (Cout,)).
    params[0] is mlp_unknow (Conv+BN, no ReLU); params[1:] are mlp_convs (Conv+BN+ReLU)."""
    B, n, _ = unknown.shape
    m = known.shape[1]
    c1 = unknow_feats.shape[1]
    c2 = known_feats.shape[1]
    c_out = params[-1][0].shape[0]
    num_conv_layers = len(params) - 1

    # n tile: cap at 1024 lanes (v7x has 64 MiB VMEM; smaller tiles cost little there).
    tn = _largest_lane_tile(n, cap=1024)
    # batch tile: stack up to 8 batch elems (<= ~2048 lanes per MLP slab).
    bt = _largest_divisor(B, min(8, max(1, 2048 // tn)))

    # bf16 MXU operands only when channel counts are wide enough to matter.
    use_bf16 = max([c1, c2] + [p[0].shape[0] for p in params]) >= 128

    unknown_t = jnp.transpose(unknown, (0, 2, 1)).astype(jnp.float32)   # (B, 3, n)

    # Fold the BN scale into the conv weights; pass only the per-channel shift.
    flat_params = []
    for (w, scale, shift) in params:
        flat_params.append((w * scale[:, None]).astype(jnp.float32))
        flat_params.append(shift.reshape(-1, 1).astype(jnp.float32))

    in_specs = [
        pl.BlockSpec((bt, 3, tn), lambda bi, j: (bi, 0, j)),
        pl.BlockSpec((bt, m, 3), lambda bi, j: (bi, 0, 0)),
        pl.BlockSpec((bt, c1, tn), lambda bi, j: (bi, 0, j)),
        pl.BlockSpec((bt, c2, m), lambda bi, j: (bi, 0, 0)),
    ]
    for p in flat_params:
        in_specs.append(pl.BlockSpec(p.shape, lambda bi, j: (0, 0)))

    kernel = make_fp_kernel(num_conv_layers, bt, use_bf16_matmul=use_bf16)

    out = pl.pallas_call(
        kernel,
        out_shape=jax.ShapeDtypeStruct((B, c_out, n), jnp.float32),
        grid_spec=pltpu.PrefetchScalarGridSpec(
            num_scalar_prefetch=0,
            grid=(B // bt, n // tn),
            in_specs=in_specs,
            out_specs=pl.BlockSpec((bt, c_out, tn), lambda bi, j: (bi, 0, j)),
        ),
        compiler_params=pltpu.CompilerParams(
            dimension_semantics=("parallel", "parallel"),
            vmem_limit_bytes=48 * 1024 * 1024,
        ),
    )(unknown_t, known.astype(jnp.float32),
      unknow_feats.astype(jnp.float32), known_feats.astype(jnp.float32),
      *flat_params)
    return out


def init_params(key, in_channels, mlp):
    """Deterministic synthetic parameters; BN (eval mode) expressed as scale/shift."""
    channel_pairs = [(in_channels, mlp[0])] + list(zip(mlp[:-1], mlp[1:]))
    params = []
    for i, (cin, cout) in enumerate(channel_pairs):
        k = jax.random.fold_in(key, i)
        kw, kb, kg, kbe, km, kv = jax.random.split(k, 6)
        w = jax.random.normal(kw, (cout, cin), jnp.float32) / jnp.sqrt(jnp.float32(cin))
        conv_b = 0.1 * jax.random.normal(kb, (cout,), jnp.float32)
        gamma = jax.random.uniform(kg, (cout,), jnp.float32, 0.5, 1.5)
        beta = 0.1 * jax.random.normal(kbe, (cout,), jnp.float32)
        mean = 0.1 * jax.random.normal(km, (cout,), jnp.float32)
        var = jax.random.uniform(kv, (cout,), jnp.float32, 0.5, 1.5)
        scale = gamma / jnp.sqrt(var + 1e-5)
        shift = (conv_b - mean) * scale + beta
        params.append((w, scale, shift))
    return params


def reference_forward(unknown, known, unknow_feats, known_feats, params):
    """Pure-JAX reference (direct (x-y)^2 distances, same tie-break, exact divides)."""
    B, n, _ = unknown.shape
    m = known.shape[1]
    diff = known[:, :, None, :] - unknown[:, None, :, :]            # (B, m, n, 3)
    dist2 = jnp.sum(diff * diff, axis=-1)                           # (B, m, n)

    row_ids = jnp.arange(m, dtype=jnp.int32).reshape(1, m, 1)
    d_work = dist2
    w_mat = jnp.zeros_like(dist2)
    recip_sum = jnp.zeros((B, 1, n), jnp.float32)
    for _ in range(3):
        dmin = jnp.min(d_work, axis=1, keepdims=True)
        sel = jnp.min(jnp.where(d_work == dmin, row_ids, m), axis=1, keepdims=True)
        is_sel = row_ids == sel
        r = 1.0 / (jnp.sqrt(dmin) + 1e-8)
        w_mat = jnp.where(is_sel, r, w_mat)
        recip_sum = recip_sum + r
        d_work = jnp.where(is_sel, jnp.inf, d_work)
    w_mat = w_mat / recip_sum

    interp = jnp.einsum('bcm,bmn->bcn', known_feats, w_mat)

    w0, s0, b0 = params[0]
    h = jnp.einsum('oc,bcn->bon', w0, unknow_feats) * s0[None, :, None] + b0[None, :, None]
    feat = interp + h
    for (w, s, b) in params[1:]:
        feat = jnp.einsum('oc,bcn->bon', w, feat) * s[None, :, None] + b[None, :, None]
        feat = jnp.maximum(feat, 0.0)
    return feat


if __name__ == "__main__":
    B, n, m = 2, 128, 16
    in_channels = 8            # C1: channels of unknow_feats
    mlp = [8, 32, 16]          # mlp[0] must equal C2 (known_feats channels)
    C1, C2 = in_channels, mlp[0]

    key = jax.random.PRNGKey(0)
    k1, k2, k3, k4, k5 = jax.random.split(key, 5)
    unknown = jax.random.uniform(k1, (B, n, 3), jnp.float32)
    known = jax.random.uniform(k2, (B, m, 3), jnp.float32)
    unknow_feats = jax.random.normal(k3, (B, C1, n), jnp.float32)
    known_feats = jax.random.normal(k4, (B, C2, m), jnp.float32)
    params = init_params(k5, in_channels, mlp)

    out = pointnet_fp_forward(unknown, known, unknow_feats, known_feats, params)
    out = jax.block_until_ready(out)

    assert out.shape == (B, mlp[-1], n), out.shape
    ref = reference_forward(unknown, known, unknow_feats, known_feats, params)
    max_err = float(jnp.max(jnp.abs(out - ref) / (1.0 + jnp.abs(ref))))
    assert max_err < 1e-2, f"max rel error {max_err}"

    print("KERNEL_OK")
</pallas_src>

<mosaic_0001>
module attributes {stable_mosaic.version = 11 : i64} {
  func.func @kernel(%arg0: i32, %arg1: i32, %arg2: memref<2x3x128xf32, #tpu.memory_space<vmem>>, %arg3: memref<2x16x3xf32, #tpu.memory_space<vmem>>, %arg4: memref<2x8x128xf32, #tpu.memory_space<vmem>>, %arg5: memref<2x8x16xf32, #tpu.memory_space<vmem>>, %arg6: memref<8x8xf32, #tpu.memory_space<vmem>>, %arg7: memref<8x1xf32, #tpu.memory_space<vmem>>, %arg8: memref<32x8xf32, #tpu.memory_space<vmem>>, %arg9: memref<32x1xf32, #tpu.memory_space<vmem>>, %arg10: memref<16x32xf32, #tpu.memory_space<vmem>>, %arg11: memref<16x1xf32, #tpu.memory_space<vmem>>, %arg12: memref<2x16x128xf32, #tpu.memory_space<vmem>>) attributes {dimension_semantics = [#tpu.dimension_semantics<parallel>, #tpu.dimension_semantics<parallel>], iteration_bounds = array<i64: 1, 1>, scalar_prefetch = 0 : i64, scratch_operands = 0 : i64, tpu.core_type = #tpu.core_type<tc>, window_params = [{transform_indices = @transform_0, window_bounds = array<i64: 2, 3, 128>}, {transform_indices = @transform_1, window_bounds = array<i64: 2, 16, 3>}, {transform_indices = @transform_2, window_bounds = array<i64: 2, 8, 128>}, {transform_indices = @transform_3, window_bounds = array<i64: 2, 8, 16>}, {pipeline_mode = #tpu.pipeline_mode<synchronous>, transform_indices = @transform_4, window_bounds = array<i64: 8, 8>}, {pipeline_mode = #tpu.pipeline_mode<synchronous>, transform_indices = @transform_5, window_bounds = array<i64: 8, 1>}, {pipeline_mode = #tpu.pipeline_mode<synchronous>, transform_indices = @transform_6, window_bounds = array<i64: 32, 8>}, {pipeline_mode = #tpu.pipeline_mode<synchronous>, transform_indices = @transform_7, window_bounds = array<i64: 32, 1>}, {pipeline_mode = #tpu.pipeline_mode<synchronous>, transform_indices = @transform_8, window_bounds = array<i64: 16, 32>}, {pipeline_mode = #tpu.pipeline_mode<synchronous>, transform_indices = @transform_9, window_bounds = array<i64: 16, 1>}, {transform_indices = @transform_10, window_bounds = array<i64: 2, 16, 128>}]} {
    %c0 = arith.constant 0 : index
    %c0_0 = arith.constant 0 : index
    %c0_1 = arith.constant 0 : index
    %0 = vector.load %arg2[%c0, %c0_0, %c0_1] : memref<2x3x128xf32, #tpu.memory_space<vmem>>, vector<1x3x128xf32>
    %1 = vector.shape_cast %0 : vector<1x3x128xf32> to vector<3x128xf32>
    %c0_2 = arith.constant 0 : index
    %c0_3 = arith.constant 0 : index
    %c0_4 = arith.constant 0 : index
    %2 = vector.load %arg3[%c0_2, %c0_3, %c0_4] : memref<2x16x3xf32, #tpu.memory_space<vmem>>, vector<1x16x3xf32>
    %3 = vector.shape_cast %2 : vector<1x16x3xf32> to vector<16x3xf32>
    %c0_5 = arith.constant 0 : index
    %c0_6 = arith.constant 0 : index
    %c0_7 = arith.constant 0 : index
    %4 = vector.load %arg5[%c0_5, %c0_6, %c0_7] : memref<2x8x16xf32, #tpu.memory_space<vmem>>, vector<1x8x16xf32>
    %5 = vector.shape_cast %4 : vector<1x8x16xf32> to vector<8x16xf32>
    %cst = arith.constant 0.000000e+00 : f32
    %6 = vector.broadcast %cst : f32 to vector<16x128xf32>
    %7 = vector.extract_strided_slice %3 {offsets = [0, 0], sizes = [16, 1], strides = [1, 1]} : vector<16x3xf32> to vector<16x1xf32>
    %8 = vector.extract_strided_slice %1 {offsets = [0, 0], sizes = [1, 128], strides = [1, 1]} : vector<3x128xf32> to vector<1x128xf32>
    %9 = vector.broadcast %7 : vector<16x1xf32> to vector<16x128xf32>
    %10 = vector.broadcast %8 : vector<1x128xf32> to vector<16x128xf32>
    %11 = arith.subf %9, %10 : vector<16x128xf32>
    %12 = arith.mulf %11, %11 : vector<16x128xf32>
    %13 = arith.addf %6, %12 : vector<16x128xf32>
    %14 = vector.extract_strided_slice %3 {offsets = [0, 1], sizes = [16, 1], strides = [1, 1]} : vector<16x3xf32> to vector<16x1xf32>
    %15 = vector.extract_strided_slice %1 {offsets = [1, 0], sizes = [1, 128], strides = [1, 1]} : vector<3x128xf32> to vector<1x128xf32>
    %16 = vector.broadcast %14 : vector<16x1xf32> to vector<16x128xf32>
    %17 = vector.broadcast %15 : vector<1x128xf32> to vector<16x128xf32>
    %18 = arith.subf %16, %17 : vector<16x128xf32>
    %19 = arith.mulf %18, %18 : vector<16x128xf32>
    %20 = arith.addf %13, %19 : vector<16x128xf32>
    %21 = vector.extract_strided_slice %3 {offsets = [0, 2], sizes = [16, 1], strides = [1, 1]} : vector<16x3xf32> to vector<16x1xf32>
    %22 = vector.extract_strided_slice %1 {offsets = [2, 0], sizes = [1, 128], strides = [1, 1]} : vector<3x128xf32> to vector<1x128xf32>
    %23 = vector.broadcast %21 : vector<16x1xf32> to vector<16x128xf32>
    %24 = vector.broadcast %22 : vector<1x128xf32> to vector<16x128xf32>
    %25 = arith.subf %23, %24 : vector<16x128xf32>
    %26 = arith.mulf %25, %25 : vector<16x128xf32>
    %27 = arith.addf %20, %26 : vector<16x128xf32>
    %28 = tpu.iota {dimensions = array<i32: 0>} : vector<16x128xi32>
    %cst_8 = arith.constant 0.000000e+00 : f32
    %29 = vector.broadcast %cst_8 : f32 to vector<16x128xf32>
    %cst_9 = arith.constant 0.000000e+00 : f32
    %30 = vector.broadcast %cst_9 : f32 to vector<1x128xf32>
    %cst_10 = arith.constant dense<0x7F800000> : vector<128xf32>
    %31 = vector.multi_reduction <minimumf>, %27, %cst_10 [0] : vector<16x128xf32> to vector<128xf32>
    %32 = vector.shape_cast %31 : vector<128xf32> to vector<1x128xf32>
    %33 = vector.broadcast %32 : vector<1x128xf32> to vector<16x128xf32>
    %34 = arith.cmpf oeq, %27, %33 : vector<16x128xf32>
    %c16_i32 = arith.constant 16 : i32
    %35 = vector.broadcast %c16_i32 : i32 to vector<16x128xi32>
    %36 = arith.select %34, %28, %35 : vector<16x128xi1>, vector<16x128xi32>
    %cst_11 = arith.constant dense<2147483647> : vector<128xi32>
    %37 = vector.multi_reduction <minsi>, %36, %cst_11 [0] : vector<16x128xi32> to vector<128xi32>
    %38 = vector.shape_cast %37 : vector<128xi32> to vector<1x128xi32>
    %39 = vector.broadcast %38 : vector<1x128xi32> to vector<16x128xi32>
    %40 = arith.cmpi eq, %28, %39 : vector<16x128xi32>
    %41 = math.sqrt %32 : vector<1x128xf32>
    %cst_12 = arith.constant 9.99999993E-9 : f32
    %42 = vector.broadcast %cst_12 : f32 to vector<1x128xf32>
    %43 = arith.addf %41, %42 : vector<1x128xf32>
    %44 = tpu.reciprocal %43 {approx = true} : vector<1x128xf32> -> vector<1x128xf32>
    %45 = vector.shape_cast %44 : vector<1x128xf32> to vector<1x128xf32>
    %46 = vector.broadcast %45 : vector<1x128xf32> to vector<16x128xf32>
    %47 = arith.select %40, %46, %29 : vector<16x128xi1>, vector<16x128xf32>
    %48 = arith.addf %30, %44 : vector<1x128xf32>
    %cst_13 = arith.constant 0x7F800000 : f32
    %49 = vector.broadcast %cst_13 : f32 to vector<16x128xf32>
    %50 = arith.select %40, %49, %27 : vector<16x128xi1>, vector<16x128xf32>
    %cst_14 = arith.constant dense<0x7F800000> : vector<128xf32>
    %51 = vector.multi_reduction <minimumf>, %50, %cst_14 [0] : vector<16x128xf32> to vector<128xf32>
    %52 = vector.shape_cast %51 : vector<128xf32> to vector<1x128xf32>
    %53 = vector.broadcast %52 : vector<1x128xf32> to vector<16x128xf32>
    %54 = arith.cmpf oeq, %50, %53 : vector<16x128xf32>
    %c16_i32_15 = arith.constant 16 : i32
    %55 = vector.broadcast %c16_i32_15 : i32 to vector<16x128xi32>
    %56 = arith.select %54, %28, %55 : vector<16x128xi1>, vector<16x128xi32>
    %cst_16 = arith.constant dense<2147483647> : vector<128xi32>
    %57 = vector.multi_reduction <minsi>, %56, %cst_16 [0] : vector<16x128xi32> to vector<128xi32>
    %58 = vector.shape_cast %57 : vector<128xi32> to vector<1x128xi32>
    %59 = vector.broadcast %58 : vector<1x128xi32> to vector<16x128xi32>
    %60 = arith.cmpi eq, %28, %59 : vector<16x128xi32>
    %61 = math.sqrt %52 : vector<1x128xf32>
    %cst_17 = arith.constant 9.99999993E-9 : f32
    %62 = vector.broadcast %cst_17 : f32 to vector<1x128xf32>
    %63 = arith.addf %61, %62 : vector<1x128xf32>
    %64 = tpu.reciprocal %63 {approx = true} : vector<1x128xf32> -> vector<1x128xf32>
    %65 = vector.shape_cast %64 : vector<1x128xf32> to vector<1x128xf32>
    %66 = vector.broadcast %65 : vector<1x128xf32> to vector<16x128xf32>
    %67 = arith.select %60, %66, %47 : vector<16x128xi1>, vector<16x128xf32>
    %68 = arith.addf %48, %64 : vector<1x128xf32>
    %cst_18 = arith.constant 0x7F800000 : f32
    %69 = vector.broadcast %cst_18 : f32 to vector<16x128xf32>
    %70 = arith.select %60, %69, %50 : vector<16x128xi1>, vector<16x128xf32>
    %cst_19 = arith.constant dense<0x7F800000> : vector<128xf32>
    %71 = vector.multi_reduction <minimumf>, %70, %cst_19 [0] : vector<16x128xf32> to vector<128xf32>
    %72 = vector.shape_cast %71 : vector<128xf32> to vector<1x128xf32>
    %73 = vector.broadcast %72 : vector<1x128xf32> to vector<16x128xf32>
    %74 = arith.cmpf oeq, %70, %73 : vector<16x128xf32>
    %c16_i32_20 = arith.constant 16 : i32
    %75 = vector.broadcast %c16_i32_20 : i32 to vector<16x128xi32>
    %76 = arith.select %74, %28, %75 : vector<16x128xi1>, vector<16x128xi32>
    %cst_21 = arith.constant dense<2147483647> : vector<128xi32>
    %77 = vector.multi_reduction <minsi>, %76, %cst_21 [0] : vector<16x128xi32> to vector<128xi32>
    %78 = vector.shape_cast %77 : vector<128xi32> to vector<1x128xi32>
    %79 = vector.broadcast %78 : vector<1x128xi32> to vector<16x128xi32>
    %80 = arith.cmpi eq, %28, %79 : vector<16x128xi32>
    %81 = math.sqrt %72 : vector<1x128xf32>
    %cst_22 = arith.constant 9.99999993E-9 : f32
    %82 = vector.broadcast %cst_22 : f32 to vector<1x128xf32>
    %83 = arith.addf %81, %82 : vector<1x128xf32>
    %84 = tpu.reciprocal %83 {approx = true} : vector<1x128xf32> -> vector<1x128xf32>
    %85 = vector.shape_cast %84 : vector<1x128xf32> to vector<1x128xf32>
    %86 = vector.broadcast %85 : vector<1x128xf32> to vector<16x128xf32>
    %87 = arith.select %80, %86, %67 : vector<16x128xi1>, vector<16x128xf32>
    %88 = arith.addf %68, %84 : vector<1x128xf32>
    %89 = tpu.reciprocal %88 {approx = true} : vector<1x128xf32> -> vector<1x128xf32>
    %90 = vector.broadcast %89 : vector<1x128xf32> to vector<16x128xf32>
    %91 = arith.mulf %87, %90 : vector<16x128xf32>
    %cst_23 = arith.constant dense<0.000000e+00> : vector<8x128xf32>
    %92 = tpu.matmul %5, %91, %cst_23 {dimension_numbers = #tpu.dot_dimension_numbers<[1], [0], [0], [1], [0, 0, 1, 1], [], []>} : vector<8x16xf32>, vector<16x128xf32>, vector<8x128xf32> -> vector<8x128xf32>
    %c0_24 = arith.constant 0 : index
    %c0_25 = arith.constant 0 : index
    %c0_26 = arith.constant 0 : index
    %93 = vector.load %arg4[%c0_24, %c0_25, %c0_26] : memref<2x8x128xf32, #tpu.memory_space<vmem>>, vector<1x8x128xf32>
    %94 = vector.shape_cast %93 : vector<1x8x128xf32> to vector<8x128xf32>
    %c1 = arith.constant 1 : index
    %c0_27 = arith.constant 0 : index
    %c0_28 = arith.constant 0 : index
    %95 = vector.load %arg2[%c1, %c0_27, %c0_28] : memref<2x3x128xf32, #tpu.memory_space<vmem>>, vector<1x3x128xf32>
    %96 = vector.shape_cast %95 : vector<1x3x128xf32> to vector<3x128xf32>
    %c1_29 = arith.constant 1 : index
    %c0_30 = arith.constant 0 : index
    %c0_31 = arith.constant 0 : index
    %97 = vector.load %arg3[%c1_29, %c0_30, %c0_31] : memref<2x16x3xf32, #tpu.memory_space<vmem>>, vector<1x16x3xf32>
    %98 = vector.shape_cast %97 : vector<1x16x3xf32> to vector<16x3xf32>
    %c1_32 = arith.constant 1 : index
    %c0_33 = arith.constant 0 : index
    %c0_34 = arith.constant 0 : index
    %99 = vector.load %arg5[%c1_32, %c0_33, %c0_34] : memref<2x8x16xf32, #tpu.memory_space<vmem>>, vector<1x8x16xf32>
    %100 = vector.shape_cast %99 : vector<1x8x16xf32> to vector<8x16xf32>
    %cst_35 = arith.constant 0.000000e+00 : f32
    %101 = vector.broadcast %cst_35 : f32 to vector<16x128xf32>
    %102 = vector.extract_strided_slice %98 {offsets = [0, 0], sizes = [16, 1], strides = [1, 1]} : vector<16x3xf32> to vector<16x1xf32>
    %103 = vector.extract_strided_slice %96 {offsets = [0, 0], sizes = [1, 128], strides = [1, 1]} : vector<3x128xf32> to vector<1x128xf32>
    %104 = vector.broadcast %102 : vector<16x1xf32> to vector<16x128xf32>
    %105 = vector.broadcast %103 : vector<1x128xf32> to vector<16x128xf32>
    %106 = arith.subf %104, %105 : vector<16x128xf32>
    %107 = arith.mulf %106, %106 : vector<16x128xf32>
    %108 = arith.addf %101, %107 : vector<16x128xf32>
    %109 = vector.extract_strided_slice %98 {offsets = [0, 1], sizes = [16, 1], strides = [1, 1]} : vector<16x3xf32> to vector<16x1xf32>
    %110 = vector.extract_strided_slice %96 {offsets = [1, 0], sizes = [1, 128], strides = [1, 1]} : vector<3x128xf32> to vector<1x128xf32>
    %111 = vector.broadcast %109 : vector<16x1xf32> to vector<16x128xf32>
    %112 = vector.broadcast %110 : vector<1x128xf32> to vector<16x128xf32>
    %113 = arith.subf %111, %112 : vector<16x128xf32>
    %114 = arith.mulf %113, %113 : vector<16x128xf32>
    %115 = arith.addf %108, %114 : vector<16x128xf32>
    %116 = vector.extract_strided_slice %98 {offsets = [0, 2], sizes = [16, 1], strides = [1, 1]} : vector<16x3xf32> to vector<16x1xf32>
    %117 = vector.extract_strided_slice %96 {offsets = [2, 0], sizes = [1, 128], strides = [1, 1]} : vector<3x128xf32> to vector<1x128xf32>
    %118 = vector.broadcast %116 : vector<16x1xf32> to vector<16x128xf32>
    %119 = vector.broadcast %117 : vector<1x128xf32> to vector<16x128xf32>
    %120 = arith.subf %118, %119 : vector<16x128xf32>
    %121 = arith.mulf %120, %120 : vector<16x128xf32>
    %122 = arith.addf %115, %121 : vector<16x128xf32>
    %123 = tpu.iota {dimensions = array<i32: 0>} : vector<16x128xi32>
    %cst_36 = arith.constant 0.000000e+00 : f32
    %124 = vector.broadcast %cst_36 : f32 to vector<16x128xf32>
    %cst_37 = arith.constant 0.000000e+00 : f32
    %125 = vector.broadcast %cst_37 : f32 to vector<1x128xf32>
    %cst_38 = arith.constant dense<0x7F800000> : vector<128xf32>
    %126 = vector.multi_reduction <minimumf>, %122, %cst_38 [0] : vector<16x128xf32> to vector<128xf32>
    %127 = vector.shape_cast %126 : vector<128xf32> to vector<1x128xf32>
    %128 = vector.broadcast %127 : vector<1x128xf32> to vector<16x128xf32>
    %129 = arith.cmpf oeq, %122, %128 : vector<16x128xf32>
    %c16_i32_39 = arith.constant 16 : i32
    %130 = vector.broadcast %c16_i32_39 : i32 to vector<16x128xi32>
    %131 = arith.select %129, %123, %130 : vector<16x128xi1>, vector<16x128xi32>
    %cst_40 = arith.constant dense<2147483647> : vector<128xi32>
    %132 = vector.multi_reduction <minsi>, %131, %cst_40 [0] : vector<16x128xi32> to vector<128xi32>
    %133 = vector.shape_cast %132 : vector<128xi32> to vector<1x128xi32>
    %134 = vector.broadcast %133 : vector<1x128xi32> to vector<16x128xi32>
    %135 = arith.cmpi eq, %123, %134 : vector<16x128xi32>
    %136 = math.sqrt %127 : vector<1x128xf32>
    %cst_41 = arith.constant 9.99999993E-9 : f32
    %137 = vector.broadcast %cst_41 : f32 to vector<1x128xf32>
    %138 = arith.addf %136, %137 : vector<1x128xf32>
    %139 = tpu.reciprocal %138 {approx = true} : vector<1x128xf32> -> vector<1x128xf32>
    %140 = vector.shape_cast %139 : vector<1x128xf32> to vector<1x128xf32>
    %141 = vector.broadcast %140 : vector<1x128xf32> to vector<16x128xf32>
    %142 = arith.select %135, %141, %124 : vector<16x128xi1>, vector<16x128xf32>
    %143 = arith.addf %125, %139 : vector<1x128xf32>
    %cst_42 = arith.constant 0x7F800000 : f32
    %144 = vector.broadcast %cst_42 : f32 to vector<16x128xf32>
    %145 = arith.select %135, %144, %122 : vector<16x128xi1>, vector<16x128xf32>
    %cst_43 = arith.constant dense<0x7F800000> : vector<128xf32>
    %146 = vector.multi_reduction <minimumf>, %145, %cst_43 [0] : vector<16x128xf32> to vector<128xf32>
    %147 = vector.shape_cast %146 : vector<128xf32> to vector<1x128xf32>
    %148 = vector.broadcast %147 : vector<1x128xf32> to vector<16x128xf32>
    %149 = arith.cmpf oeq, %145, %148 : vector<16x128xf32>
    %c16_i32_44 = arith.constant 16 : i32
    %150 = vector.broadcast %c16_i32_44 : i32 to vector<16x128xi32>
    %151 = arith.select %149, %123, %150 : vector<16x128xi1>, vector<16x128xi32>
    %cst_45 = arith.constant dense<2147483647> : vector<128xi32>
    %152 = vector.multi_reduction <minsi>, %151, %cst_45 [0] : vector<16x128xi32> to vector<128xi32>
    %153 = vector.shape_cast %152 : vector<128xi32> to vector<1x128xi32>
    %154 = vector.broadcast %153 : vector<1x128xi32> to vector<16x128xi32>
    %155 = arith.cmpi eq, %123, %154 : vector<16x128xi32>
    %156 = math.sqrt %147 : vector<1x128xf32>
    %cst_46 = arith.constant 9.99999993E-9 : f32
    %157 = vector.broadcast %cst_46 : f32 to vector<1x128xf32>
    %158 = arith.addf %156, %157 : vector<1x128xf32>
    %159 = tpu.reciprocal %158 {approx = true} : vector<1x128xf32> -> vector<1x128xf32>
    %160 = vector.shape_cast %159 : vector<1x128xf32> to vector<1x128xf32>
    %161 = vector.broadcast %160 : vector<1x128xf32> to vector<16x128xf32>
    %162 = arith.select %155, %161, %142 : vector<16x128xi1>, vector<16x128xf32>
    %163 = arith.addf %143, %159 : vector<1x128xf32>
    %cst_47 = arith.constant 0x7F800000 : f32
    %164 = vector.broadcast %cst_47 : f32 to vector<16x128xf32>
    %165 = arith.select %155, %164, %145 : vector<16x128xi1>, vector<16x128xf32>
    %cst_48 = arith.constant dense<0x7F800000> : vector<128xf32>
    %166 = vector.multi_reduction <minimumf>, %165, %cst_48 [0] : vector<16x128xf32> to vector<128xf32>
    %167 = vector.shape_cast %166 : vector<128xf32> to vector<1x128xf32>
    %168 = vector.broadcast %167 : vector<1x128xf32> to vector<16x128xf32>
    %169 = arith.cmpf oeq, %165, %168 : vector<16x128xf32>
    %c16_i32_49 = arith.constant 16 : i32
    %170 = vector.broadcast %c16_i32_49 : i32 to vector<16x128xi32>
    %171 = arith.select %169, %123, %170 : vector<16x128xi1>, vector<16x128xi32>
    %cst_50 = arith.constant dense<2147483647> : vector<128xi32>
    %172 = vector.multi_reduction <minsi>, %171, %cst_50 [0] : vector<16x128xi32> to vector<128xi32>
    %173 = vector.shape_cast %172 : vector<128xi32> to vector<1x128xi32>
    %174 = vector.broadcast %173 : vector<1x128xi32> to vector<16x128xi32>
    %175 = arith.cmpi eq, %123, %174 : vector<16x128xi32>
    %176 = math.sqrt %167 : vector<1x128xf32>
    %cst_51 = arith.constant 9.99999993E-9 : f32
    %177 = vector.broadcast %cst_51 : f32 to vector<1x128xf32>
    %178 = arith.addf %176, %177 : vector<1x128xf32>
    %179 = tpu.reciprocal %178 {approx = true} : vector<1x128xf32> -> vector<1x128xf32>
    %180 = vector.shape_cast %179 : vector<1x128xf32> to vector<1x128xf32>
    %181 = vector.broadcast %180 : vector<1x128xf32> to vector<16x128xf32>
    %182 = arith.select %175, %181, %162 : vector<16x128xi1>, vector<16x128xf32>
    %183 = arith.addf %163, %179 : vector<1x128xf32>
    %184 = tpu.reciprocal %183 {approx = true} : vector<1x128xf32> -> vector<1x128xf32>
    %185 = vector.broadcast %184 : vector<1x128xf32> to vector<16x128xf32>
    %186 = arith.mulf %182, %185 : vector<16x128xf32>
    %cst_52 = arith.constant dense<0.000000e+00> : vector<8x128xf32>
    %187 = tpu.matmul %100, %186, %cst_52 {dimension_numbers = #tpu.dot_dimension_numbers<[1], [0], [0], [1], [0, 0, 1, 1], [], []>} : vector<8x16xf32>, vector<16x128xf32>, vector<8x128xf32> -> vector<8x128xf32>
    %c1_53 = arith.constant 1 : index
    %c0_54 = arith.constant 0 : index
    %c0_55 = arith.constant 0 : index
    %188 = vector.load %arg4[%c1_53, %c0_54, %c0_55] : memref<2x8x128xf32, #tpu.memory_space<vmem>>, vector<1x8x128xf32>
    %189 = vector.shape_cast %188 : vector<1x8x128xf32> to vector<8x128xf32>
    %190 = tpu.concatenate %92, %187 in 1 : vector<8x128xf32>, vector<8x128xf32> -> vector<8x256xf32>
    %191 = tpu.concatenate %94, %189 in 1 : vector<8x128xf32>, vector<8x128xf32> -> vector<8x256xf32>
    %c0_56 = arith.constant 0 : index
    %c0_57 = arith.constant 0 : index
    %192 = vector.load %arg6[%c0_56, %c0_57] : memref<8x8xf32, #tpu.memory_space<vmem>>, vector<8x8xf32>
    %c0_58 = arith.constant 0 : index
    %c0_59 = arith.constant 0 : index
    %193 = vector.load %arg7[%c0_58, %c0_59] : memref<8x1xf32, #tpu.memory_space<vmem>>, vector<8x1xf32>
    %cst_60 = arith.constant dense<0.000000e+00> : vector<8x256xf32>
    %194 = tpu.matmul %192, %191, %cst_60 {dimension_numbers = #tpu.dot_dimension_numbers<[1], [0], [0], [1], [0, 0, 1, 1], [], []>} : vector<8x8xf32>, vector<8x256xf32>, vector<8x256xf32> -> vector<8x256xf32>
    %195 = arith.addf %190, %194 : vector<8x256xf32>
    %196 = vector.broadcast %193 : vector<8x1xf32> to vector<8x256xf32>
    %197 = arith.addf %195, %196 : vector<8x256xf32>
    %c0_61 = arith.constant 0 : index
    %c0_62 = arith.constant 0 : index
    %198 = vector.load %arg8[%c0_61, %c0_62] : memref<32x8xf32, #tpu.memory_space<vmem>>, vector<32x8xf32>
    %c0_63 = arith.constant 0 : index
    %c0_64 = arith.constant 0 : index
    %199 = vector.load %arg9[%c0_63, %c0_64] : memref<32x1xf32, #tpu.memory_space<vmem>>, vector<32x1xf32>
    %cst_65 = arith.constant dense<0.000000e+00> : vector<32x256xf32>
    %200 = tpu.matmul %198, %197, %cst_65 {dimension_numbers = #tpu.dot_dimension_numbers<[1], [0], [0], [1], [0, 0, 1, 1], [], []>} : vector<32x8xf32>, vector<8x256xf32>, vector<32x256xf32> -> vector<32x256xf32>
    %201 = vector.broadcast %199 : vector<32x1xf32> to vector<32x256xf32>
    %202 = arith.addf %200, %201 : vector<32x256xf32>
    %cst_66 = arith.constant 0.000000e+00 : f32
    %203 = vector.broadcast %cst_66 : f32 to vector<32x256xf32>
    %204 = arith.maximumf %202, %203 : vector<32x256xf32>
    %c0_67 = arith.constant 0 : index
    %c0_68 = arith.constant 0 : index
    %205 = vector.load %arg10[%c0_67, %c0_68] : memref<16x32xf32, #tpu.memory_space<vmem>>, vector<16x32xf32>
    %c0_69 = arith.constant 0 : index
    %c0_70 = arith.constant 0 : index
    %206 = vector.load %arg11[%c0_69, %c0_70] : memref<16x1xf32, #tpu.memory_space<vmem>>, vector<16x1xf32>
    %cst_71 = arith.constant dense<0.000000e+00> : vector<16x256xf32>
    %207 = tpu.matmul %205, %204, %cst_71 {dimension_numbers = #tpu.dot_dimension_numbers<[1], [0], [0], [1], [0, 0, 1, 1], [], []>} : vector<16x32xf32>, vector<32x256xf32>, vector<16x256xf32> -> vector<16x256xf32>
    %208 = vector.broadcast %206 : vector<16x1xf32> to vector<16x256xf32>
    %209 = arith.addf %207, %208 : vector<16x256xf32>
    %cst_72 = arith.constant 0.000000e+00 : f32
    %210 = vector.broadcast %cst_72 : f32 to vector<16x256xf32>
    %211 = arith.maximumf %209, %210 : vector<16x256xf32>
    %212 = vector.extract_strided_slice %211 {offsets = [0, 0], sizes = [16, 128], strides = [1, 1]} : vector<16x256xf32> to vector<16x128xf32>
    %c0_73 = arith.constant 0 : index
    %c0_74 = arith.constant 0 : index
    %c0_75 = arith.constant 0 : index
    %213 = vector.load %arg12[%c0_73, %c0_74, %c0_75] : memref<2x16x128xf32, #tpu.memory_space<vmem>>, vector<1x16x128xf32>
    %214 = vector.shape_cast %213 : vector<1x16x128xf32> to vector<16x128xf32>
    %215 = vector.shape_cast %212 : vector<16x128xf32> to vector<1x16x128xf32>
    tpu.vector_store %arg12[%c0_73, %c0_74, %c0_75], %215 {strides = array<i32>} : memref<2x16x128xf32, #tpu.memory_space<vmem>>, vector<1x16x128xf32>,
    %216 = vector.extract_strided_slice %211 {offsets = [0, 128], sizes = [16, 128], strides = [1, 1]} : vector<16x256xf32> to vector<16x128xf32>
    %c1_76 = arith.constant 1 : index
    %c0_77 = arith.constant 0 : index
    %c0_78 = arith.constant 0 : index
    %217 = vector.load %arg12[%c1_76, %c0_77, %c0_78] : memref<2x16x128xf32, #tpu.memory_space<vmem>>, vector<1x16x128xf32>
    %218 = vector.shape_cast %217 : vector<1x16x128xf32> to vector<16x128xf32>
    %219 = vector.shape_cast %216 : vector<16x128xf32> to vector<1x16x128xf32>
    tpu.vector_store %arg12[%c1_76, %c0_77, %c0_78], %219 {strides = array<i32>} : memref<2x16x128xf32, #tpu.memory_space<vmem>>, vector<1x16x128xf32>,
    return
  }
  func.func @transform_0(%arg0: i32, %arg1: i32) -> (i32, i32, i32) {
    %c0_i32 = arith.constant 0 : i32
    %c0_i32_0 = arith.constant 0 : i32
    return %arg0, %c0_i32, %arg1 : i32, i32, i32
  }
  func.func @transform_1(%arg0: i32, %arg1: i32) -> (i32, i32, i32) {
    %c0_i32 = arith.constant 0 : i32
    %c0_i32_0 = arith.constant 0 : i32
    %c0_i32_1 = arith.constant 0 : i32
    return %arg0, %c0_i32, %c0_i32_0 : i32, i32, i32
  }
  func.func @transform_2(%arg0: i32, %arg1: i32) -> (i32, i32, i32) {
    %c0_i32 = arith.constant 0 : i32
    %c0_i32_0 = arith.constant 0 : i32
    return %arg0, %c0_i32, %arg1 : i32, i32, i32
  }
  func.func @transform_3(%arg0: i32, %arg1: i32) -> (i32, i32, i32) {
    %c0_i32 = arith.constant 0 : i32
    %c0_i32_0 = arith.constant 0 : i32
    %c0_i32_1 = arith.constant 0 : i32
    return %arg0, %c0_i32, %c0_i32_0 : i32, i32, i32
  }
  func.func @transform_4(%arg0: i32, %arg1: i32) -> (i32, i32) {
    %c0_i32 = arith.constant 0 : i32
    %c0_i32_0 = arith.constant 0 : i32
    %c0_i32_1 = arith.constant 0 : i32
    return %c0_i32, %c0_i32_0 : i32, i32
  }
  func.func @transform_5(%arg0: i32, %arg1: i32) -> (i32, i32) {
    %c0_i32 = arith.constant 0 : i32
    %c0_i32_0 = arith.constant 0 : i32
    %c0_i32_1 = arith.constant 0 : i32
    return %c0_i32, %c0_i32_0 : i32, i32
  }
  func.func @transform_6(%arg0: i32, %arg1: i32) -> (i32, i32) {
    %c0_i32 = arith.constant 0 : i32
    %c0_i32_0 = arith.constant 0 : i32
    %c0_i32_1 = arith.constant 0 : i32
    return %c0_i32, %c0_i32_0 : i32, i32
  }
  func.func @transform_7(%arg0: i32, %arg1: i32) -> (i32, i32) {
    %c0_i32 = arith.constant 0 : i32
    %c0_i32_0 = arith.constant 0 : i32
    %c0_i32_1 = arith.constant 0 : i32
    return %c0_i32, %c0_i32_0 : i32, i32
  }
  func.func @transform_8(%arg0: i32, %arg1: i32) -> (i32, i32) {
    %c0_i32 = arith.constant 0 : i32
    %c0_i32_0 = arith.constant 0 : i32
    %c0_i32_1 = arith.constant 0 : i32
    return %c0_i32, %c0_i32_0 : i32, i32
  }
  func.func @transform_9(%arg0: i32, %arg1: i32) -> (i32, i32) {
    %c0_i32 = arith.constant 0 : i32
    %c0_i32_0 = arith.constant 0 : i32
    %c0_i32_1 = arith.constant 0 : i32
    return %c0_i32, %c0_i32_0 : i32, i32
  }
  func.func @transform_10(%arg0: i32, %arg1: i32) -> (i32, i32, i32) {
    %c0_i32 = arith.constant 0 : i32
    %c0_i32_0 = arith.constant 0 : i32
    return %arg0, %c0_i32, %arg1 : i32, i32, i32
  }
}

</mosaic_0001>

<bundles_post_ra>
// kernel: tpu_custom_call.1
= control target key start
LH: loop header
LB: loop body
LE: loop exit
PB: predicated region body
PF: predicated region fallthrough
CT: control target
= control target key end

     0   :  { %v990_v1 = vmov 2   ;;  %v991_v2 = vmov 1   ;;  %s1322_s0 = inlined_call_operand.vmem [shape: f32[2,3,128], index: 0, kind: input, shape index: {}]   ;;  %s1323_s1 = inlined_call_operand.vmem [shape: f32[2,16,3], index: 1, kind: input, shape index: {}]   ;;  %s1324_s2 = inlined_call_operand.vmem [shape: f32[2,8,128], index: 2, kind: input, shape index: {}]   ;;  %s1325_s3 = inlined_call_operand.vmem [shape: f32[2,8,16], index: 3, kind: input, shape index: {}]   ;;  %s1326_s4 = inlined_call_operand.vmem [shape: f32[8,8], index: 4, kind: input, shape index: {}]   ;;  %s1327_s5 = inlined_call_operand.vmem [shape: f32[8,1], index: 5, kind: input, shape index: {}]   ;;  %s1328_s6 = inlined_call_operand.vmem [shape: f32[32,8], index: 6, kind: input, shape index: {}]   ;;  %s1329_s7 = inlined_call_operand.vmem [shape: f32[32,1], index: 7, kind: input, shape index: {}]   ;;  %s1330_s8 = inlined_call_operand.vmem [shape: f32[16,32], index: 8, kind: input, shape index: {}]   ;;  %s1331_s9 = inlined_call_operand.vmem [shape: f32[16,1], index: 9, kind: input, shape index: {}]   ;;  %s1332_s10 = inlined_call_operand.hbm [shape: f32[2,16,128], index: 10, kind: output, shape index: {}]  }
   0x1   :  { %v37_v0 = vld [vmem:[%s1323_s1] sm:$0xff]  ;;  %931 = vset.pattern.permute.xlu0 %v990_v1  ;;  %930 = vset.pattern.permute.xlu1 %v991_v2 }
   0x2   :  { %15 = vsyncpa [#allocation3], 0  ;;  %79 = vperm.xlu0 %931, %v37_v0   ;;  %61 = vperm.xlu1 %930, %v37_v0   ;;  %v38_v3 = vld [vmem:[%s1323_s1 + $0x8] sm:$0xff]  ;;  %v992_v4 = vmov 0   ;;  %v891_v5 = vld [vmem:[%s1323_s1 + $0x18] sm:$0xff]  ;;  %v993_v7 = vmov 0.0   ;;  %v50_v8 = vlaneseq }
   0x3   :  { %v890_v6 = vld [vmem:[%s1323_s1 + $0x10] sm:$0xff]  ;;  %908 = vmatprep.subr.mxu0 %v993_v7  ;;  %915 = vmatprep.subr.mxu1 %v993_v7  ;;  %v36_v12 = vld [vmem:[%s1322_s0] sm:$0x7]  ;;  %v889_v40 = vld [vmem:[%s1322_s0 + $0x4] sm:$0x7]  ;;  %vm994_vm0 = vmmov 0  }
   0x4   :  { %v1067_v9 = vshrl.u32 %v50_v8, 7  ;;  %912 = vmatprep.mubr.msk.f32.mxu0 %vm994_vm0, %v993_v7  ;;  %919 = vmatprep.mubr.msk.f32.mxu1 %vm994_vm0, %v993_v7  ;;  %s995_s29 = smov [#allocation2]  }
   0x5   :  { %s877_s30 = sshll.u32 %s995_s29, 4  ;;  %s878_s30 = int_to_ptr.vmem [resolvable:$true] %s877_s30 }
   0x6   :  { %932 = vset.pattern.permute.xlu0 %v992_v4  ;;  %65 = vperm.xlu1 %930, %v38_v3   ;;  %v70_v10 = vsub.s32 1, %v1067_v9  ;;  %v52_v11 = vsub.s32 0, %v1067_v9  ;;  %v88_v14 = vsub.s32 2, %v1067_v9  ;;  %v1087_v61 = vadd.s32 8, %v1067_v9  ;;  %p973_p1 = scmp.lt.s32.totalorder %s878_s30, %s878_s30 }
   0x7   :  { %42 = vperm.xlu0 %932, %v37_v0  }
   0x8   :  { %v71_v16 = vrot.slane %v36_v12, %v70_v10  ;;  %v53_v17 = vrot.slane %v36_v12, %v52_v11  ;;  %v89_v18 = vrot.slane %v36_v12, %v88_v14  ;;  %v327_v41 = vrot.slane %v889_v40, %v70_v10 }
   0x9   :  { %v309_v44 = vrot.slane %v889_v40, %v52_v11  ;;  %v345_v48 = vrot.slane %v889_v40, %v88_v14 }
   0xa   :  { %933 = vset.pattern.permute.xlu1 %v990_v1 }
   0xb   :  { %47 = vperm.xlu0 %932, %v38_v3   ;;  %83 = vperm.xlu1 %933, %v38_v3  }
   0xf   :  { %934 = vset.pattern.permute.xlu1 %v992_v4  ;;  %303 = vperm.xlu0 %932, %v891_v5  }
  0x10   :  { %298 = vperm.xlu1 %934, %v890_v6  }
  0x13   :  { %936 = vset.pattern.permute.xlu0 %v990_v1 }
  0x14   :  { %935 = vset.pattern.permute.xlu1 %v991_v2  ;;  %335 = vperm.xlu0 %936, %v890_v6  }
  0x15   :  { %317 = vperm.xlu1 %935, %v890_v6  }
  0x18   :  { %939 = vset.pattern.permute.xlu0 %v992_v4 }
  0x19   :  { %321 = vperm.xlu1 %935, %v891_v5  }
  0x1d   :  { %937 = vset.pattern.permute.xlu1 %v990_v1 }
  0x1e   :  { %339 = vperm.xlu1 %937, %v891_v5  }
  0x22   :  { %938 = vset.pattern.permute.xlu1 %v992_v4 }
  0x7d   :  { %v62_v13 = vpop.permute.xlu1 %61  ;;  %v80_v15 = vpop.permute.xlu0 %79 }
  0x7e   :  { %v72_v21 = vsub.f32 %v62_v13, %v71_v16  ;;  %v90_v23 = vsub.f32 %v80_v15, %v89_v18 }
  0x80   :  { %v74_v28 = vmul.f32 %v72_v21, %v72_v21  ;;  %v92_v31 = vmul.f32 %v90_v23, %v90_v23  ;;  %v543_v23 = vld [vmem:[%s1327_s5] sm:$0xff] }
  0x81   :  { %v66_v19 = vpop.permute.xlu1 %65  ;;  %623 = vperm.xlu1 %938, %v543_v23  }
  0x82   :  { %v43_v20 = vpop.permute.xlu0 %42  ;;  %v73_v24 = vsub.f32 %v66_v19, %v71_v16 }
  0x83   :  { %v54_v22 = vsub.f32 %v43_v20, %v53_v17 }
  0x84   :  { %v75_v32 = vmul.f32 %v73_v24, %v73_v24 }
  0x85   :  { %v56_v25 = vmul.f32 %v54_v22, %v54_v22 }
  0x86   :  { %v48_v26 = vpop.permute.xlu0 %47  ;;  %v84_v27 = vpop.permute.xlu1 %83 }
  0x87   :  { %v55_v29 = vsub.f32 %v48_v26, %v53_v17  ;;  %v91_v30 = vsub.f32 %v84_v27, %v89_v18  ;;  %v76_v33 = vadd.f32 %v74_v28, %v56_v25  ;;  %v634_v27 = vld [vmem:[%s1329_s7 + $0x10] sm:$0xff] }
  0x88   :  { %648 = vperm.xlu1 %938, %v634_v27  }
  0x89   :  { %v57_v34 = vmul.f32 %v55_v29, %v55_v29  ;;  %v93_v36 = vmul.f32 %v91_v30, %v91_v30  ;;  %v1075_v38 = vadd.f32 %v92_v31, %v76_v33 }
  0x8a   :  { %v304_v43 = vpop.permute.xlu0 %303 }
  0x8b   :  { %v77_v35 = vadd.f32 %v75_v32, %v57_v34  ;;  %v299_v37 = vpop.permute.xlu1 %298  ;;  %v311_v55 = vsub.f32 %v304_v43, %v309_v44 }
  0x8c   :  { %v310_v51 = vsub.f32 %v299_v37, %v309_v44  ;;  %v767_v44 = vld [vmem:[%s1331_s9] sm:$0xff] }
  0x8d   :  { %v1077_v39 = vadd.f32 %v93_v36, %v77_v35  ;;  %v313_v0 = vmul.f32 %v311_v55, %v311_v55  ;;  %v633_v35 = vld [vmem:[%s1329_s7 + $0x8] sm:$0xff] }
  0x8e   :  { %v312_v59 = vmul.f32 %v310_v51, %v310_v51  ;;  %643 = vperm.xlu1 %938, %v633_v35  }
  0x8f   :  { %v99_v42 = vmin.f32 %v1075_v38, %v1077_v39  ;;  %v336_v50 = vpop.permute.xlu0 %335 }
  0x90   :  { %v318_v45 = vpop.permute.xlu1 %317  ;;  %v346_v57 = vsub.f32 %v336_v50, %v345_v48 }
  0x91   :  { %v100_v46 = vrot.slane %v99_v42, 4  ;;  %v328_v47 = vsub.f32 %v318_v45, %v327_v41 }
  0x92   :  { %v348_v2 = vmul.f32 %v346_v57, %v346_v57  ;;  %771 = vperm.xlu1 %938, %v767_v44  }
  0x93   :  { %v101_v49 = vmin.f32 %v99_v42, %v100_v46  ;;  %v330_v56 = vmul.f32 %v328_v47, %v328_v47 }
  0x94   :  { %v322_v52 = vpop.permute.xlu1 %321 }
  0x95   :  { %v102_v53 = vrot.slane %v101_v49, 2  ;;  %v329_v54 = vsub.f32 %v322_v52, %v327_v41  ;;  %v332_v1 = vadd.f32 %v330_v56, %v312_v59 }
  0x97   :  { %v103_v58 = vmin.f32 %v101_v49, %v102_v53  ;;  %v331_v60 = vmul.f32 %v329_v54, %v329_v54  ;;  %v1093_v11 = vadd.f32 %v348_v2, %v332_v1 }
  0x99   :  { %v104_v62 = vrot.slane %v103_v58, 1  ;;  %v340_v63 = vpop.permute.xlu1 %339  ;;  %v333_v5 = vadd.f32 %v331_v60, %v313_v0 }
  0x9a   :  { %v347_v3 = vsub.f32 %v340_v63, %v345_v48 }
  0x9b   :  { %v105_v4 = vmin.f32 %v103_v58, %v104_v62 }
  0x9c   :  { %v349_v6 = vmul.f32 %v347_v3, %v347_v3 }
  0x9d   :  { %vm106_vm1 = vcmp.eq.f32.partialorder %v1075_v38, %v105_v4  ;;  %vm107_vm2 = vcmp.eq.f32.partialorder %v1077_v39, %v105_v4  ;;  %940 = vrsqrt.f32 %v105_v4  ;;  %vm125_vm7 = vcmp.eq.f32.partialorder %v105_v4, inf }
  0x9e   :  { %v108_v8 = vsel %vm106_vm1, %v1067_v9, 16  ;;  %v109_v10 = vsel %vm107_vm2, %v1087_v61, 16  ;;  %v1095_v12 = vadd.f32 %v349_v6, %v333_v5  ;;  %vm127_vm8 = vcmp.eq.f32.partialorder %v105_v4, 0.0 }
  0x9f   :  { %vm110_vm3 = vcmp.lt.s32.totalorder %v108_v8, %v109_v10  ;;  %v128_v32 = vand.u32 2147483648, %v105_v4 }
  0xa0   :  { %v111_v13 = vsel %vm110_vm3, %v108_v8, %v109_v10  ;;  %v352_v14 = vmin.f32 %v1093_v11, %v1095_v12 }
  0xa1   :  { %v112_v15 = vrot.slane %v111_v13, 4 }
  0xa2   :  { %v353_v16 = vrot.slane %v352_v14, 4 }
  0xa3   :  { %vm113_vm4 = vcmp.lt.s32.totalorder %v111_v13, %v112_v15 }
  0xa4   :  { %v114_v17 = vsel %vm113_vm4, %v111_v13, %v112_v15  ;;  %v354_v18 = vmin.f32 %v352_v14, %v353_v16 }
  0xa5   :  { %v115_v19 = vrot.slane %v114_v17, 2 }
  0xa6   :  { %v355_v20 = vrot.slane %v354_v18, 2 }
  0xa7   :  { %vm116_vm5 = vcmp.lt.s32.totalorder %v114_v17, %v115_v19 }
  0xa8   :  { %v117_v21 = vsel %vm116_vm5, %v114_v17, %v115_v19  ;;  %v356_v22 = vmin.f32 %v354_v18, %v355_v20 }
  0xa9   :  { %v118_v24 = vrot.slane %v117_v21, 1 }
  0xaa   :  { %v941_v25 = vpop.eup %940  ;;  %v357_v26 = vrot.slane %v356_v22, 1 }
  0xab   :  { %vm119_vm6 = vcmp.lt.s32.totalorder %v117_v21, %v118_v24  ;;  %v124_v28 = vmul.f32 %v941_v25, %v105_v4 }
  0xac   :  { %v120_v29 = vsel %vm119_vm6, %v117_v21, %v118_v24  ;;  %v1105_v30 = vmin.f32 %v356_v22, %v357_v26 }
  0xad   :  { %vm121_vm9 = vcmp.eq.s32.totalorder %v1067_v9, %v120_v29  ;;  %vm122_vm10 = vcmp.eq.s32.totalorder %v1087_v61, %v120_v29  ;;  %v126_v31 = vsel %vm125_vm7, %v105_v4, %v124_v28 }
  0xae   :  { %v1112_v33 = vsel %vm121_vm9, inf, %v1075_v38  ;;  %v1117_v34 = vsel %vm122_vm10, inf, %v1077_v39  ;;  %vm359_vm11 = vcmp.eq.f32.partialorder %v1093_v11, %v1105_v30  ;;  %vm360_vm12 = vcmp.eq.f32.partialorder %v1095_v12, %v1105_v30 }
  0xaf   :  { %v137_v36 = vmin.f32 %v1112_v33, %v1117_v34  ;;  %v361_v37 = vsel %vm359_vm11, %v1067_v9, 16  ;;  %v362_v38 = vsel %vm360_vm12, %v1087_v61, 16  ;;  %942 = vrsqrt.f32 %v1105_v30 }
  0xb0   :  { %vm363_vm13 = vcmp.lt.s32.totalorder %v361_v37, %v362_v38  ;;  %v129_v39 = vsel %vm127_vm8, %v128_v32, %v126_v31  ;;  %vm378_vm6 = vcmp.eq.f32.partialorder %v1105_v30, inf  ;;  %v381_v4 = vand.u32 2147483648, %v1105_v30 }
  0xb1   :  { %v138_v40 = vrot.slane %v137_v36, 4  ;;  %v364_v41 = vsel %vm363_vm13, %v361_v37, %v362_v38  ;;  %v130_v42 = vadd.f32 1e-08, %v129_v39  ;;  %vm380_vm7 = vcmp.eq.f32.partialorder %v1105_v30, 0.0 }
  0xb2   :  { %v365_v43 = vrot.slane %v364_v41, 4 }
  0xb3   :  { %v139_v45 = vmin.f32 %v137_v36, %v138_v40  ;;  %944 = vrcp.f32 %v130_v42 }
  0xb4   :  { %vm366_vm14 = vcmp.lt.s32.totalorder %v364_v41, %v365_v43 }
  0xb5   :  { %v140_v46 = vrot.slane %v139_v45, 2  ;;  %v367_v47 = vsel %vm366_vm14, %v364_v41, %v365_v43 }
  0xb6   :  { %v368_v48 = vrot.slane %v367_v47, 2 }
  0xb7   :  { %v141_v49 = vmin.f32 %v139_v45, %v140_v46 }
  0xb8   :  { %vm369_vm15 = vcmp.lt.s32.totalorder %v367_v47, %v368_v48 }
  0xb9   :  { %v142_v50 = vrot.slane %v141_v49, 1  ;;  %v370_v51 = vsel %vm369_vm15, %v367_v47, %v368_v48 }
  0xba   :  { %v371_v52 = vrot.slane %v370_v51, 1 }
  0xbb   :  { %v143_v53 = vmin.f32 %v141_v49, %v142_v50 }
  0xbc   :  { %v943_v54 = vpop.eup %942  ;;  %vm372_vm0 = vcmp.lt.s32.totalorder %v370_v51, %v371_v52 }
  0xbd   :  { %vm144_vm1 = vcmp.eq.f32.partialorder %v1112_v33, %v143_v53  ;;  %vm145_vm2 = vcmp.eq.f32.partialorder %v1117_v34, %v143_v53  ;;  %946 = vrsqrt.f32 %v143_v53  ;;  %v1137_v55 = vsel %vm372_vm0, %v370_v51, %v371_v52 }
  0xbe   :  { %v146_v56 = vsel %vm144_vm1, %v1067_v9, 16  ;;  %v147_v57 = vsel %vm145_vm2, %v1087_v61, 16  ;;  %vm374_vm3 = vcmp.eq.s32.totalorder %v1067_v9, %v1137_v55  ;;  %vm375_vm4 = vcmp.eq.s32.totalorder %v1087_v61, %v1137_v55 }
  0xbf   :  { %vm148_vm5 = vcmp.lt.s32.totalorder %v146_v56, %v147_v57  ;;  %v377_v58 = vmul.f32 %v943_v54, %v1105_v30  ;;  %v1150_v59 = vsel %vm374_vm3, inf, %v1093_v11  ;;  %v1156_v60 = vsel %vm375_vm4, inf, %v1095_v12 }
  0xc0   :  { %v1158_v62 = vpop.eup %944  ;;  %v149_v63 = vsel %vm148_vm5, %v146_v56, %v147_v57  ;;  %v390_v0 = vmin.f32 %v1150_v59, %v1156_v60  ;;  %vm163_vm11 = vcmp.eq.f32.partialorder %v143_v53, inf  ;;  %v166_v23 = vand.u32 2147483648, %v143_v53 }
  0xc1   :  { %v150_v1 = vrot.slane %v149_v63, 4  ;;  %v1166_v2 = vsel %vm122_vm10, %v1158_v62, 0.0  ;;  %v1171_v3 = vsel %vm121_vm9, %v1158_v62, 0.0  ;;  %v379_v6 = vsel %vm378_vm6, %v1105_v30, %v377_v58 }
  0xc2   :  { %v391_v5 = vrot.slane %v390_v0, 4  ;;  %v382_v8 = vsel %vm380_vm7, %v381_v4, %v379_v6  ;;  %vm165_vm14 = vcmp.eq.f32.partialorder %v143_v53, 0.0 }
  0xc3   :  { %vm151_vm8 = vcmp.lt.s32.totalorder %v149_v63, %v150_v1  ;;  %v383_v12 = vadd.f32 1e-08, %v382_v8 }
  0xc4   :  { %v392_v10 = vmin.f32 %v390_v0, %v391_v5  ;;  %v152_v11 = vsel %vm151_vm8, %v149_v63, %v150_v1 }
  0xc5   :  { %v153_v13 = vrot.slane %v152_v11, 2  ;;  %948 = vrcp.f32 %v383_v12 }
  0xc6   :  { %v393_v14 = vrot.slane %v392_v10, 2 }
  0xc7   :  { %vm154_vm10 = vcmp.lt.s32.totalorder %v152_v11, %v153_v13 }
  0xc8   :  { %v394_v15 = vmin.f32 %v392_v10, %v393_v14  ;;  %v155_v16 = vsel %vm154_vm10, %v152_v11, %v153_v13 }
  0xc9   :  { %v156_v17 = vrot.slane %v155_v16, 1 }
  0xca   :  { %v947_v18 = vpop.eup %946  ;;  %v395_v19 = vrot.slane %v394_v15, 1 }
  0xcb   :  { %vm157_vm9 = vcmp.lt.s32.totalorder %v155_v16, %v156_v17  ;;  %v162_v20 = vmul.f32 %v947_v18, %v143_v53 }
  0xcc   :  { %v396_v21 = vmin.f32 %v394_v15, %v395_v19  ;;  %v1176_v22 = vsel %vm157_vm9, %v155_v16, %v156_v17 }
  0xcd   :  { %vm159_vm12 = vcmp.eq.s32.totalorder %v1067_v9, %v1176_v22  ;;  %vm160_vm13 = vcmp.eq.s32.totalorder %v1087_v61, %v1176_v22  ;;  %v164_v24 = vsel %vm163_vm11, %v143_v53, %v162_v20  ;;  %v894_v22 = vld [vmem:[%s1324_s2 + $0x8] sm:$0xff] }
  0xce   :  { %vm397_vm15 = vcmp.eq.f32.partialorder %v1150_v59, %v396_v21  ;;  %vm398_vm0 = vcmp.eq.f32.partialorder %v1156_v60, %v396_v21  ;;  %950 = vrsqrt.f32 %v396_v21  ;;  %v167_v25 = vsel %vm165_vm14, %v166_v23, %v164_v24 }
  0xcf   :  { %v399_v26 = vsel %vm397_vm15, %v1067_v9, 16  ;;  %v400_v27 = vsel %vm398_vm0, %v1087_v61, 16  ;;  %v168_v28 = vadd.f32 1e-08, %v167_v25  ;;  %v173_v29 = vsel %vm159_vm12, inf, %v1112_v33 }
  0xd0   :  { %vm401_vm1 = vcmp.lt.s32.totalorder %v399_v26, %v400_v27  ;;  %v174_v30 = vsel %vm160_vm13, inf, %v1117_v34  ;;  %v419_v52 = vand.u32 2147483648, %v396_v21  ;;  %vm418_vm8 = vcmp.eq.f32.partialorder %v396_v21, 0.0 }
  0xd1   :  { %v402_v31 = vsel %vm401_vm1, %v399_v26, %v400_v27  ;;  %952 = vrcp.f32 %v168_v28  ;;  %v175_v32 = vmin.f32 %v173_v29, %v174_v30 }
  0xd2   :  { %v403_v35 = vrot.slane %v402_v31, 4  ;;  %v1194_v36 = vpop.eup %948 }
  0xd3   :  { %v176_v37 = vrot.slane %v175_v32, 4  ;;  %v1200_v38 = vsel %vm375_vm4, %v1194_v36, 0.0  ;;  %v385_v33 = vsel %vm374_vm3, %v1194_v36, 0.0  ;;  %vm416_vm4 = vcmp.eq.f32.partialorder %v396_v21, inf }
  0xd4   :  { %vm404_vm2 = vcmp.lt.s32.totalorder %v402_v31, %v403_v35 }
  0xd5   :  { %v177_v34 = vmin.f32 %v175_v32, %v176_v37  ;;  %v405_v39 = vsel %vm404_vm2, %v402_v31, %v403_v35 }
  0xd6   :  { %v406_v40 = vrot.slane %v405_v39, 2 }
  0xd7   :  { %v178_v41 = vrot.slane %v177_v34, 2 }
  0xd8   :  { %vm407_vm5 = vcmp.lt.s32.totalorder %v405_v39, %v406_v40 }
  0xd9   :  { %v179_v42 = vmin.f32 %v177_v34, %v178_v41  ;;  %v408_v43 = vsel %vm407_vm5, %v405_v39, %v406_v40 }
  0xda   :  { %v409_v44 = vrot.slane %v408_v43, 1 }
  0xdb   :  { %v951_v45 = vpop.eup %950  ;;  %v180_v46 = vrot.slane %v179_v42, 1 }
  0xdc   :  { %vm410_vm6 = vcmp.lt.s32.totalorder %v408_v43, %v409_v44  ;;  %v415_v47 = vmul.f32 %v951_v45, %v396_v21 }
  0xdd   :  { %v181_v48 = vmin.f32 %v179_v42, %v180_v46  ;;  %v1206_v49 = vsel %vm410_vm6, %v408_v43, %v409_v44 }
  0xde   :  { %v1208_v50 = vpop.eup %952  ;;  %vm412_vm3 = vcmp.eq.s32.totalorder %v1067_v9, %v1206_v49  ;;  %vm413_vm7 = vcmp.eq.s32.totalorder %v1087_v61, %v1206_v49  ;;  %v417_v51 = vsel %vm416_vm4, %v396_v21, %v415_v47 }
  0xdf   :  { %954 = vrsqrt.f32 %v181_v48  ;;  %v1219_v53 = vsel %vm159_vm12, %v1208_v50, %v1171_v3  ;;  %v420_v54 = vsel %vm418_vm8, %v419_v52, %v417_v51  ;;  %v426_v55 = vsel %vm412_vm3, inf, %v1150_v59  ;;  %v542_v52 = vld [vmem:[%s1326_s4] sm:$0xff] }
  0xe0   :  { %v427_v56 = vsel %vm413_vm7, inf, %v1156_v60  ;;  %v421_v57 = vadd.f32 1e-08, %v420_v54  ;;  %vm182_vm10 = vcmp.eq.f32.partialorder %v173_v29, %v181_v48  ;;  %vm183_vm9 = vcmp.eq.f32.partialorder %v174_v30, %v181_v48 }
  0xe1   :  { %v428_v58 = vmin.f32 %v426_v55, %v427_v56  ;;  %v184_v1 = vsel %vm182_vm10, %v1067_v9, 16  ;;  %v185_v3 = vsel %vm183_vm9, %v1087_v61, 16  ;;  %vm201_vm12 = vcmp.eq.f32.partialorder %v181_v48, inf }
  0xe2   :  { %956 = vrcp.f32 %v421_v57  ;;  %vm186_vm11 = vcmp.lt.s32.totalorder %v184_v1, %v185_v3  ;;  %v204_v60 = vand.u32 2147483648, %v181_v48  ;;  %vm203_vm14 = vcmp.eq.f32.partialorder %v181_v48, 0.0 }
  0xe3   :  { %v429_v63 = vrot.slane %v428_v58, 4  ;;  %v187_v10 = vsel %vm186_vm11, %v184_v1, %v185_v3  ;;  %v172_v24 = vadd.f32 %v1208_v50, %v1158_v62  ;;  %v171_v40 = vsel %vm160_vm13, %v1208_v50, %v1166_v2  ;;  %v39_v2 = vld [vmem:[%s1325_s3] sm:$0xff] }
  0xe4   :  { %v188_v15 = vrot.slane %v187_v10, 4  ;;  %vm214_vm13 = vcmask 130048  }
  0xe5   :  { %v430_v0 = vmin.f32 %v428_v58, %v429_v63 }
  0xe6   :  { %vm189_vm15 = vcmp.lt.s32.totalorder %v187_v10, %v188_v15 }
  0xe7   :  { %v431_v4 = vrot.slane %v430_v0, 2  ;;  %v190_v18 = vsel %vm189_vm15, %v187_v10, %v188_v15  ;;  %v631_v15 = vld [vmem:[%s1328_s6 + $0x18] sm:$0xff] }
  0xe8   :  { %v191_v21 = vrot.slane %v190_v18, 2 }
  0xe9   :  { %v432_v5 = vmin.f32 %v430_v0, %v431_v4  ;;  %v892_v0 = vld [vmem:[%s1325_s3 + $0x8] sm:$0xff] }
  0xea   :  { %vm192_vm5 = vcmp.lt.s32.totalorder %v190_v18, %v191_v21 }
  0xeb   :  { %v433_v6 = vrot.slane %v432_v5, 1  ;;  %v193_v32 = vsel %vm192_vm5, %v190_v18, %v191_v21 }
  0xec   :  { %v955_v59 = vpop.eup %954 }
  0xed   :  { %v200_v8 = vmul.f32 %v955_v59, %v181_v48  ;;  %v434_v11 = vmin.f32 %v432_v5, %v433_v6 }
  0xef   :  { %v202_v12 = vsel %vm201_vm12, %v181_v48, %v200_v8  ;;  %958 = vrsqrt.f32 %v434_v11  ;;  %v1231_v14 = vpop.eup %956  ;;  %vm435_vm0 = vcmp.eq.f32.partialorder %v426_v55, %v434_v11  ;;  %vm436_vm1 = vcmp.eq.f32.partialorder %v427_v56, %v434_v11 }
  0xf0   :  { %v205_v13 = vsel %vm203_vm14, %v204_v60, %v202_v12  ;;  %v1237_v17 = vsel %vm412_vm3, %v1231_v14, %v385_v33  ;;  %v437_v19 = vsel %vm435_vm0, %v1067_v9, 16  ;;  %v438_v20 = vsel %vm436_vm1, %v1087_v61, 16  ;;  %v628_v12 = vld [vmem:[%s1328_s6] sm:$0xff] }
  0xf1   :  { %v206_v16 = vadd.f32 1e-08, %v205_v13  ;;  %vm439_vm2 = vcmp.lt.s32.totalorder %v437_v19, %v438_v20  ;;  %vm454_vm6 = vcmp.eq.f32.partialorder %v434_v11, inf  ;;  %v457_v27 = vand.u32 2147483648, %v434_v11  ;;  %v629_v13 = vld [vmem:[%s1328_s6 + $0x8] sm:$0xff] }
  0xf2   :  { %v440_v26 = vsel %vm439_vm2, %v437_v19, %v438_v20  ;;  %vm456_vm4 = vcmp.eq.f32.partialorder %v434_v11, 0.0  ;;  %v194_v33 = vrot.slane %v193_v32, 1  ;;  %v425_v44 = vadd.f32 %v1231_v14, %v1194_v36  ;;  %v288_v36 = vld [vmem:[%s1324_s2] sm:$0xff] }
  0xf3   :  { %960 = vrcp.f32 %v206_v16  ;;  %v441_v35 = vrot.slane %v440_v26, 4  ;;  %vm544_vm12 = vcmask 64512   ;;  %v424_v54 = vsel %vm413_vm7, %v1231_v14, %v1200_v38  ;;  %v768_v38 = vld [vmem:[%s1331_s9 + $0x8] sm:$0xff]  ;;  %v630_v14 = vld [vmem:[%s1328_s6 + $0x10] sm:$0xff] }
  0xf4   :  { %vm195_vm8 = vcmp.lt.s32.totalorder %v193_v32, %v194_v33  ;;  %vm779_vm7 = vcmask 261120  }
  0xf5   :  { %vm442_vm3 = vcmp.lt.s32.totalorder %v440_v26, %v441_v35  ;;  %v196_v62 = vsel %vm195_vm8, %v193_v32, %v194_v33 }
  0xf6   :  { %v443_v34 = vsel %vm442_vm3, %v440_v26, %v441_v35  ;;  %vm197_vm10 = vcmp.eq.s32.totalorder %v1067_v9, %v196_v62  ;;  %vm198_vm9 = vcmp.eq.s32.totalorder %v1087_v61, %v196_v62 }
  0xf7   :  { %v444_v39 = vrot.slane %v443_v34, 2 }
  0xf9   :  { %vm445_vm11 = vcmp.lt.s32.totalorder %v443_v34, %v444_v39 }
  0xfa   :  { %v446_v50 = vsel %vm445_vm11, %v443_v34, %v444_v39 }
  0xfb   :  { %v447_v51 = vrot.slane %v446_v50, 1 }
  0xfc   :  { %v959_v23 = vpop.eup %958  ;;  %v624_v8 = vpop.permute.xlu1 %623 }
  0xfd   :  { %v453_v25 = vmul.f32 %v959_v23, %v434_v11  ;;  %vm448_vm14 = vcmp.lt.s32.totalorder %v446_v50, %v447_v51 }
  0xff   :  { %v455_v29 = vsel %vm454_vm6, %v434_v11, %v453_v25 }
 0x100   :  { %v961_v28 = vpop.eup %960  ;;  %v458_v31 = vsel %vm456_vm4, %v457_v27, %v455_v29 }
 0x101   :  { %v210_v30 = vadd.f32 %v961_v28, %v172_v24  ;;  %v459_v37 = vadd.f32 1e-08, %v458_v31  ;;  %v209_v42 = vsel %vm198_vm9, %v961_v28, %v171_v40  ;;  %v208_v43 = vsel %vm197_vm10, %v961_v28, %v1219_v53 }
 0x102   :  { %v449_v53 = vsel %vm448_vm14, %v446_v50, %v447_v51 }
 0x103   :  { %962 = vrcp.f32 %v210_v30  ;;  %vm450_vm15 = vcmp.eq.s32.totalorder %v1067_v9, %v449_v53  ;;  %vm451_vm0 = vcmp.eq.s32.totalorder %v1087_v61, %v449_v53  ;;  %v635_v9 = vld [vmem:[%s1329_s7 + $0x18] sm:$0xff]  ;;  %v632_v61 = vld [vmem:[%s1329_s7] sm:$0xff]  ;;  %v649_v21 = vpop.permute.xlu1 %648 }
 0x104   :  { %964 = vrcp.f32 %v459_v37  ;;  %653 = vperm.xlu0 %939, %v635_v9  }
 0x108   :  { %638 = vperm.xlu0 %939, %v632_v61  }
 0x109   :  { %v644_v30 = vpop.permute.xlu1 %643 }
 0x10c   :  { %776 = vperm.xlu0 %939, %v768_v38  }
 0x110   :  { %v963_v41 = vpop.eup %962 }
 0x111   :  { %v965_v45 = vpop.eup %964  ;;  %v213_v46 = vmul.f32 %v963_v41, %v209_v42  ;;  %v212_v47 = vmul.f32 %v963_v41, %v208_v43 }
 0x112   :  { %v463_v48 = vadd.f32 %v965_v45, %v425_v44  ;;  %v462_v56 = vsel %vm451_vm0, %v965_v45, %v424_v54  ;;  %v461_v57 = vsel %vm450_vm15, %v965_v45, %v1237_v17 }
 0x113   :  { %909 = vmatpush3.msra.mxu0 %v213_v46  ;;  %v765_v46 = vld [vmem:[%s1330_s8] sm:$0xff] }
 0x114   :  { %910 = vmatprep.subr.mxu0 %v993_v7  ;;  %966 = vrcp.f32 %v463_v48  ;;  %v772_v48 = vpop.permute.xlu1 %771 }
 0x115   :  { %911 = vmatpush3.msra.mxu0 %v212_v47  ;;  %v766_v47 = vld [vmem:[%s1330_s8 + $0x8] sm:$0xff]  ;;  %s968_s8 = scalar_lea.vmem %s878_s30, 512 }
 0x116   :  { %913 = vmatmul.mubr.msk.f32.vlgmr.msra.gmra.mxu0 %vm214_vm13, %v39_v2  ;;  %578 = vmatprep.subr.mxu0 %v894_v22  ;;  %p969_p0 = scmp.ne.s32.totalorder %s878_s30, %s968_s8  ;;  %p974_p2 = scmp.lt.s32.totalorder %s968_s8, %s968_s8 }
 0x117   :  { %579 = vmatpush1.msra.mxu0 %v288_v36  ;;  %612 = vmatprep.mubr.f32.mxu0 %v993_v7 }
 0x118   :  { %p975_p3 = por %p974_p2, %p973_p1 }
 0x11a   :  { %895 = vmatmul.mubr.msk.f32.vlgmr.msra.gmra.mxu0 %vm544_vm12, %v542_v52  ;;  %p976_p4 = pnand %p975_p3, %p969_p0 }
 0x11b   :  { %850 = vmatprep.mubr.f32.mxu0 %v993_v7 }
 0x121   :  { %v967_v55 = vpop.eup %966 }
 0x122   :  { %v466_v58 = vmul.f32 %v967_v55, %v462_v56  ;;  %v465_v63 = vmul.f32 %v967_v55, %v461_v57 }
 0x124   :  { %916 = vmatpush3.msra.mxu1 %v466_v58 }
 0x125   :  { %917 = vmatprep.subr.mxu1 %v993_v7 }
 0x126   :  { %918 = vmatpush3.msra.mxu1 %v465_v63 }
 0x127   :  { %920 = vmatmul.mubr.msk.f32.vlgmr.msra.gmra.mxu1 %vm214_vm13, %v892_v0 }
 0x128   :  { %732 = vmatprep.mubr.f32.mxu1 %v993_v7 }
 0x17f   :  { %v654_v24 = vpop.permute.xlu0 %653 }
 0x183   :  { %v639_v32 = vpop.permute.xlu0 %638 }
 0x187   :  { %v777_v52 = vpop.permute.xlu0 %776 }
 0x1d6   :  { %v284_v49 = vpop.f32.mrf.mxu0 }
 0x1d8   :  { %v914_v1 = vpop.f32.mrf.mxu0 }
 0x1da   :  { %v614_v3 = vpop.f32.mrf.mxu0 }
 0x1db   :  { %v619_v4 = vadd.f32 %v614_v3, %v284_v49 }
 0x1dc   :  { %v616_v5 = vpop.f32.mrf.mxu0 }
 0x1dd   :  { %v626_v11 = vadd.f32 %v624_v8, %v619_v4 }
 0x1e7   :  { %v536_v59 = vpop.f32.mrf.mxu1 }
 0x1e8   :  { %v620_v6 = vadd.f32 %v616_v5, %v536_v59 }
 0x1e9   :  { %v921_v10 = vpop.f32.mrf.mxu1 }
 0x1ea   :  { %v627_v60 = vadd.f32 %v624_v8, %v620_v6 }
 0x1ec   :  { %698 = vmatprep.subr.mxu1 %v627_v60 }
 0x1ed   :  { %699 = vmatpush1.msra.mxu1 %v626_v11 }
 0x1ee   :  { %896 = vmatmul.mubr.msk.f32.vlgmr.msra.gmra.mxu1 %vm544_vm12, %v628_v12 }
 0x1ef   :  { %738 = vmatprep.mubr.f32.mxu1 %v993_v7 }
 0x1f2   :  { %897 = vmatmul.mubr.msk.f32.gmra.mxu1 %vm544_vm12, %v629_v13 }
 0x1f3   :  { %744 = vmatprep.mubr.f32.mxu1 %v993_v7 }
 0x1f6   :  { %898 = vmatmul.mubr.msk.f32.gmra.mxu1 %vm544_vm12, %v630_v14 }
 0x1f7   :  { %750 = vmatprep.mubr.f32.mxu1 %v993_v7 }
 0x1fa   :  { %899 = vmatmul.mubr.msk.f32.gmra.mxu1 %vm544_vm12, %v631_v15 }
 0x2ae   :  { %v734_v16 = vpop.f32.mrf.mxu1 }
 0x2af   :  { %v735_v40 = vadd.f32 %v734_v16, %v639_v32 }
 0x2b0   :  { %v736_v17 = vpop.f32.mrf.mxu1 }
 0x2b1   :  { %v737_v62 = vadd.f32 %v736_v17, %v639_v32  ;;  %v757_v45 = vmax.f32 %v735_v40, 0.0 }
 0x2b2   :  { %v740_v18 = vpop.f32.mrf.mxu1 }
 0x2b3   :  { %v741_v33 = vadd.f32 %v740_v18, %v644_v30  ;;  %v758_v44 = vmax.f32 %v737_v62, 0.0 }
 0x2b4   :  { %v742_v19 = vpop.f32.mrf.mxu1 }
 0x2b5   :  { %v743_v35 = vadd.f32 %v742_v19, %v644_v30  ;;  %v759_v43 = vmax.f32 %v741_v33, 0.0 }
 0x2b6   :  { %v746_v20 = vpop.f32.mrf.mxu1 }
 0x2b7   :  { %v747_v31 = vadd.f32 %v746_v20, %v649_v21  ;;  %v760_v42 = vmax.f32 %v743_v35, 0.0 }
 0x2b8   :  { %v748_v23 = vpop.f32.mrf.mxu1 }
 0x2b9   :  { %v749_v28 = vadd.f32 %v748_v23, %v649_v21  ;;  %v761_v41 = vmax.f32 %v747_v31, 0.0 }
 0x2ba   :  { %v752_v25 = vpop.f32.mrf.mxu1 }
 0x2bb   :  { %v753_v26 = vadd.f32 %v752_v25, %v654_v24  ;;  %v762_v39 = vmax.f32 %v749_v28, 0.0 }
 0x2bc   :  { %v754_v27 = vpop.f32.mrf.mxu1 }
 0x2bd   :  { %v755_v29 = vadd.f32 %v754_v27, %v654_v24  ;;  %v763_v34 = vmax.f32 %v753_v26, 0.0 }
 0x2bf   :  { %v764_v37 = vmax.f32 %v755_v29, 0.0 }
 0x2c1   :  { %810 = vmatprep.subr.mxu0 %v764_v37 }
 0x2c2   :  { %811 = vmatpush1.msra.mxu0 %v763_v34 }
 0x2c3   :  { %812 = vmatprep.subr.mxu0 %v762_v39 }
 0x2c4   :  { %813 = vmatpush1.msra.mxu0 %v761_v41 }
 0x2c5   :  { %814 = vmatprep.subr.mxu0 %v760_v42 }
 0x2c6   :  { %815 = vmatpush1.msra.mxu0 %v759_v43 }
 0x2c7   :  { %816 = vmatprep.subr.mxu0 %v758_v44 }
 0x2c8   :  { %817 = vmatpush1.msra.mxu0 %v757_v45 }
 0x2c9   :  { %900 = vmatmul.mubr.msk.f32.vlgmr.msra.gmra.mxu0 %vm779_vm7, %v765_v46 }
 0x2ca   :  { %856 = vmatprep.mubr.f32.mxu0 %v993_v7 }
 0x2cd   :  { %901 = vmatmul.mubr.msk.f32.gmra.mxu0 %vm779_vm7, %v766_v47 }
 0x389   :  { %v852_v2 = vpop.f32.mrf.mxu0 }
 0x38a   :  { %v853_v22 = vadd.f32 %v852_v2, %v772_v48 }
 0x38b   :  { %v854_v50 = vpop.f32.mrf.mxu0 }
 0x38c   :  { %v863_v36 = vmax.f32 %v853_v22, 0.0  ;;  %v855_v51 = vadd.f32 %v854_v50, %v772_v48 }
 0x38d   :  { %v858_v53 = vpop.f32.mrf.mxu0 }
 0x38e   :  { %867 = vst [vmem:[#allocation2] sm:$0xff] %v863_v36  ;;  %v864_v54 = vmax.f32 %v855_v51, 0.0  ;;  %v859_v55 = vadd.f32 %v858_v53, %v777_v52 }
 0x38f   :  { %v860_v56 = vpop.f32.mrf.mxu0 }
 0x390   :  { %870 = vst [vmem:[#allocation2 + $0x10] sm:$0xff] %v864_v54  ;;  %v865_v7 = vmax.f32 %v859_v55, 0.0  ;;  %v861_v57 = vadd.f32 %v860_v56, %v777_v52 }
 0x392   :  { %868 = vst [vmem:[#allocation2 + $0x8] sm:$0xff] %v865_v7  ;;  %v866_v58 = vmax.f32 %v861_v57, 0.0 }
 0x394   :  { %871 = vst [vmem:[#allocation2 + $0x18] sm:$0xff] %v866_v58 }
 0x395   :  { %979 = shalt.err (!%p976_p4)
}
 0x396   :  { %s996_s11 = smov 128   ;;  %s997_s12 = smov 8  }
 0x397   :  { %883 = dma.vmem_to_hbm [thread:$0]  %s878_s30, 512, %s1332_s10, [#allocation3], %s996_s11, %s996_s11, %s997_s12  }
 0x398   :  { %988 = dma.done.wait [#allocation3], 512  }
 0x399   :  { %989 = vsyncadd [#allocation3], 4294966784 }
 0x39a   :  { %887 = vsyncpa [#allocation3], 1 }

</bundles_post_ra>
